<compile_context>
chip_gen: v5e
topology: v5e:2x2
jax: 0.10.0
libtpu: 0.0.40
codegen_flags: <defaults>
</compile_context>

<pallas_src>
import functools

import jax
import jax.numpy as jnp
from jax.experimental import pallas as pl
from jax.experimental.pallas import tpu as pltpu


# ---------------------------------------------------------------------------
# Parameter folding helpers (run once, outside the kernel; all tiny).
# ---------------------------------------------------------------------------
def fold_bn(conv_bias, gamma, beta, mean, var, eps=1e-5):
    s = gamma / jnp.sqrt(var + eps)
    t = (conv_bias - mean) * s + beta
    return s, t


def _upsample_row_matrix(up_w, w1):
    """ConvTranspose2d(C, C, 2, 2, stride 2) as ONE per-input-row matmul.

    up_w: [Cin, Cout, 2, 2] (PyTorch layout).  Returns B of shape
    [W1*Cin, 2*W1u*Cout] where columns [0 : W1u*Cout] produce output row
    parity 0 and columns [W1u*Cout : ] parity 1, each flattened as (w, c):
      B[w*Cin+ci, i*(W1u*Cout) + (2w+j)*Cout + co] = up_w[ci, co, i, j]
    so (x1_row_flat @ B)[:, i*W1u*Cout:(i+1)*W1u*Cout] is output row (2h+i).
    """
    cin, cout = up_w.shape[0], up_w.shape[1]
    w1u = 2 * w1
    w_idx = jnp.arange(w1)
    mats = []
    for i in range(2):
        B = jnp.zeros((w1, cin, w1u, cout), up_w.dtype)
        for j in range(2):
            B = B.at[w_idx, :, 2 * w_idx + j, :].set(up_w[:, :, i, j])
        mats.append(B.reshape(w1 * cin, w1u * cout))
    return jnp.concatenate(mats, axis=1)


def _conv_row_toeplitz(w_hwio, w_out):
    """3x3 SAME conv along W as 3 per-kh Toeplitz matmuls (row-flattened layout).

    w_hwio: [3, 3, Cin, Cout].  Returns T of shape [3, (w_out+2)*Cin, w_out*Cout]
    with T[kh, u*Cin+ci, s*Cout+co] = w[kh, u-s, ci, co] for 0 <= u-s <= 2.
    The conv output is  sum_kh  P[kh:kh+H, :] @ T[kh]  where P is the
    zero-padded input in [H+2, (W+2)*Cin] layout.
    """
    kh_sz, kw_sz, cin, cout = w_hwio.shape
    wp = w_out + 2
    s_idx = jnp.arange(w_out)
    taps = []
    for kh in range(kh_sz):
        T = jnp.zeros((wp, cin, w_out, cout), w_hwio.dtype)
        for kw in range(kw_sz):
            T = T.at[s_idx + kw, :, s_idx, :].set(w_hwio[kh, kw])
        taps.append(T.reshape(wp * cin, w_out * cout))
    return jnp.stack(taps, axis=0)


# ---------------------------------------------------------------------------
# The single fused kernel: one grid step == one batch element.
# ---------------------------------------------------------------------------
def _fused_upsampling_block_kernel(
    x1_ref, x2_ref, bcat_ref, bup_ref, t1_ref, t2_ref, bb1_ref, bb2_ref,
    o_ref, xcat_ref, xp2_ref,
    *, H1, W1, C, H2, W2, Cout, pt, plft):
    W1u = 2 * W1
    part = (W2 + 2) * C            # column offset of the x1u half inside xcat rows

    # ---- 1) ConvTranspose2d(2x2, stride 2): ONE row matmul on the MXU.
    #         Columns [0:W1u*C] -> output row parity 0, [W1u*C:] -> parity 1.
    x1r = x1_ref[0]                                                   # [H1, W1*C]
    y = jnp.dot(x1r, bcat_ref[...], preferred_element_type=jnp.float32) + bup_ref[...]
    y0 = y[:, :W1u * C]
    y1 = y[:, W1u * C:]

    # ---- 2) Build padded cat([x2, x1u]) in VMEM.  Zeros give both the F.pad
    #         placement padding and the SAME-conv halo; row layout per row is
    #         [x2_pad_row | x1u_pad_row].
    xcat_ref[...] = jnp.zeros_like(xcat_ref)
    xcat_ref[1:1 + H2, C:C + W2 * C] = x2_ref[0]                      # x2 half
    # x1u half: static pad / crop placement (matches F.pad with negative pads).
    w_lo = max(0, plft)
    w_hi = min(W2, plft + W1u)
    if w_hi > w_lo:
        src_lo = (w_lo - plft) * C
        src_hi = (w_hi - plft) * C
        dst_lo = part + (1 + w_lo) * C
        dst_hi = part + (1 + w_hi) * C
        ys = (y0, y1)
        for h in range(H1):
            for i in range(2):
                r = pt + 2 * h + i
                if 0 <= r < H2:
                    xcat_ref[1 + r:2 + r, dst_lo:dst_hi] = ys[i][h:h + 1, src_lo:src_hi]

    # ---- 3) Conv3x3 + folded BN + ReLU (#1): 3 Toeplitz matmuls, K=(W2+2)*2C.
    #         BN scale already folded into t1, so only a bias add remains.
    acc = jnp.dot(xcat_ref[0:H2, :], t1_ref[0], preferred_element_type=jnp.float32)
    for kh in range(1, 3):
        acc = acc + jnp.dot(xcat_ref[kh:kh + H2, :], t1_ref[kh],
                            preferred_element_type=jnp.float32)
    h1 = jnp.maximum(acc + bb1_ref[...], 0.0)                         # [H2, W2*Cout]
    # Dropout2d(p=0.1) is identity at inference.

    # ---- 4) Conv3x3 + folded BN + ReLU (#2).
    xp2_ref[...] = jnp.zeros_like(xp2_ref)
    xp2_ref[1:1 + H2, Cout:Cout + W2 * Cout] = h1
    acc2 = jnp.dot(xp2_ref[0:H2, :], t2_ref[0], preferred_element_type=jnp.float32)
    for kh in range(1, 3):
        acc2 = acc2 + jnp.dot(xp2_ref[kh:kh + H2, :], t2_ref[kh],
                              preferred_element_type=jnp.float32)
    o_ref[0] = jnp.maximum(acc2 + bb2_ref[...], 0.0)                  # [H2, W2*Cout]


# ---------------------------------------------------------------------------
# Wrapper: parameter folding (free, once) + one fused pallas_call.
# ---------------------------------------------------------------------------
def upsampling_block_forward(x1, x2, p):
    N, H1, W1, C = x1.shape
    N2, H2, W2, C2 = x2.shape
    assert N2 == N and C2 == C
    Cout = p["c1_w"].shape[-1]
    H1u, W1u = 2 * H1, 2 * W1
    pt = (H2 - H1u) // 2
    plft = (W2 - W1u) // 2

    # Matmul-friendly, row-flattened parameters.
    Bcat = _upsample_row_matrix(p["up_w"], W1)                        # [W1*C, 2*W1u*C]
    bup = jnp.tile(p["up_b"], 2 * W1u)[None, :]                       # [1, 2*W1u*C]

    s1, t1b = fold_bn(p["c1_b"], p["bn1_g"], p["bn1_b"], p["bn1_m"], p["bn1_v"])
    s2, t2b = fold_bn(p["c2_b"], p["bn2_g"], p["bn2_b"], p["bn2_m"], p["bn2_v"])
    # conv1 consumes cat([x2, x1u]) along channels: split its weight into the
    # two halves, stack the Toeplitz blocks along K, and fold the BN scale
    # directly into the matmul matrices (saves one VPU mul per element).
    T1a = _conv_row_toeplitz(p["c1_w"][:, :, :C, :], W2)
    T1b = _conv_row_toeplitz(p["c1_w"][:, :, C:, :], W2)
    T1 = jnp.concatenate([T1a, T1b], axis=1)                          # [3, (W2+2)*2C, W2*Cout]
    T1 = T1 * jnp.tile(s1, W2)[None, None, :]
    T2 = _conv_row_toeplitz(p["c2_w"], W2)                            # [3, (W2+2)*Cout, W2*Cout]
    T2 = T2 * jnp.tile(s2, W2)[None, None, :]
    b1r = jnp.tile(t1b, W2)[None, :]
    b2r = jnp.tile(t2b, W2)[None, :]

    # Row-flattened activations (free metadata reshapes in HBM).
    x1r = x1.reshape(N, H1, W1 * C)
    x2r = x2.reshape(N, H2, W2 * C)

    kernel = functools.partial(
        _fused_upsampling_block_kernel,
        H1=H1, W1=W1, C=C, H2=H2, W2=W2, Cout=Cout, pt=pt, plft=plft)

    out = pl.pallas_call(
        kernel,
        out_shape=jax.ShapeDtypeStruct((N, H2, W2 * Cout), jnp.float32),
        grid=(N,),
        in_specs=[
            pl.BlockSpec((1, H1, W1 * C), lambda n: (n, 0, 0)),
            pl.BlockSpec((1, H2, W2 * C), lambda n: (n, 0, 0)),
            pl.BlockSpec(Bcat.shape, lambda n: (0, 0)),
            pl.BlockSpec(bup.shape, lambda n: (0, 0)),
            pl.BlockSpec(T1.shape, lambda n: (0, 0, 0)),
            pl.BlockSpec(T2.shape, lambda n: (0, 0, 0)),
            pl.BlockSpec(b1r.shape, lambda n: (0, 0)),
            pl.BlockSpec(b2r.shape, lambda n: (0, 0)),
        ],
        out_specs=pl.BlockSpec((1, H2, W2 * Cout), lambda n: (n, 0, 0)),
        scratch_shapes=[
            pltpu.VMEM((H2 + 2, (W2 + 2) * 2 * C), jnp.float32),  # padded cat(x2, x1u)
            pltpu.VMEM((H2 + 2, (W2 + 2) * Cout), jnp.float32),   # padded conv1 output
        ],
        compiler_params=pltpu.CompilerParams(
            dimension_semantics=("parallel",)),
    )(x1r, x2r, Bcat, bup, T1, T2, b1r, b2r)
    return out.reshape(N, H2, W2, Cout)


# ---------------------------------------------------------------------------
# Pure-JAX reference for verification (independent of the kernel formulation).
# ---------------------------------------------------------------------------
def reference_forward(x1, x2, p):
    N, H, W, C = x1.shape
    up = jnp.einsum("nhwc,coij->nhiwjo", x1, p["up_w"])
    up = up.reshape(N, 2 * H, 2 * W, -1) + p["up_b"]
    dx = x2.shape[1] - up.shape[1]
    dy = x2.shape[2] - up.shape[2]
    pt, plft = dx // 2, dy // 2
    pb = x2.shape[1] - (up.shape[1] + pt)
    pr = x2.shape[2] - (up.shape[2] + plft)
    up = jax.lax.pad(up, jnp.float32(0.0),
                     ((0, 0, 0), (pt, pb, 0), (plft, pr, 0), (0, 0, 0)))
    x = jnp.concatenate([x2, up], axis=-1)

    def block(x, w, cb, g, b, m, v):
        y = jax.lax.conv_general_dilated(
            x, w, window_strides=(1, 1), padding="SAME",
            dimension_numbers=("NHWC", "HWIO", "NHWC")) + cb
        y = (y - m) / jnp.sqrt(v + 1e-5) * g + b
        return jnp.maximum(y, 0.0)

    x = block(x, p["c1_w"], p["c1_b"], p["bn1_g"], p["bn1_b"], p["bn1_m"], p["bn1_v"])
    x = block(x, p["c2_w"], p["c2_b"], p["bn2_g"], p["bn2_b"], p["bn2_m"], p["bn2_v"])
    return x


if __name__ == "__main__":
    key = jax.random.PRNGKey(0)
    ks = jax.random.split(key, 16)

    # UpsamplingBlock(in_channels=8, out_channels=4, bilinear=False)
    in_ch, out_ch = 8, 4
    ch = in_ch // 2                      # channels of x1 and x2
    N, H2, W2 = 2, 16, 16                # x2 spatial
    H1, W1 = H2 // 2, W2 // 2            # x1 spatial

    x1 = jax.random.normal(ks[0], (N, H1, W1, ch), jnp.float32)   # NHWC
    x2 = jax.random.normal(ks[1], (N, H2, W2, ch), jnp.float32)   # NHWC

    params = {
        # ConvTranspose2d(ch, ch, 2, 2): PyTorch weight layout (in, out, kH, kW)
        "up_w": 0.2 * jax.random.normal(ks[2], (ch, ch, 2, 2), jnp.float32),
        "up_b": 0.1 * jax.random.normal(ks[3], (ch,), jnp.float32),
        # Conv2d(in_ch, out_ch, 3, pad=1), HWIO layout
        "c1_w": 0.2 * jax.random.normal(ks[4], (3, 3, in_ch, out_ch), jnp.float32),
        "c1_b": 0.1 * jax.random.normal(ks[5], (out_ch,), jnp.float32),
        "bn1_g": 1.0 + 0.1 * jax.random.normal(ks[6], (out_ch,), jnp.float32),
        "bn1_b": 0.1 * jax.random.normal(ks[7], (out_ch,), jnp.float32),
        "bn1_m": 0.1 * jax.random.normal(ks[8], (out_ch,), jnp.float32),
        "bn1_v": 1.0 + 0.1 * jnp.abs(jax.random.normal(ks[9], (out_ch,), jnp.float32)),
        # Conv2d(out_ch, out_ch, 3, pad=1), HWIO layout
        "c2_w": 0.2 * jax.random.normal(ks[10], (3, 3, out_ch, out_ch), jnp.float32),
        "c2_b": 0.1 * jax.random.normal(ks[11], (out_ch,), jnp.float32),
        "bn2_g": 1.0 + 0.1 * jax.random.normal(ks[12], (out_ch,), jnp.float32),
        "bn2_b": 0.1 * jax.random.normal(ks[13], (out_ch,), jnp.float32),
        "bn2_m": 0.1 * jax.random.normal(ks[14], (out_ch,), jnp.float32),
        "bn2_v": 1.0 + 0.1 * jnp.abs(jax.random.normal(ks[15], (out_ch,), jnp.float32)),
    }

    out = jax.block_until_ready(upsampling_block_forward(x1, x2, params))
    ref = jax.block_until_ready(reference_forward(x1, x2, params))

    assert out.shape == (N, H2, W2, out_ch), out.shape
    assert jnp.allclose(out, ref, atol=1e-4, rtol=1e-4), float(jnp.max(jnp.abs(out - ref)))
    print("KERNEL_OK")
</pallas_src>

<mosaic_0001>
module attributes {stable_mosaic.version = 11 : i64} {
  func.func @_fused_upsampling_block_kernel(%arg0: i32, %arg1: memref<1x8x32xf32, #tpu.memory_space<vmem>>, %arg2: memref<1x16x64xf32, #tpu.memory_space<vmem>>, %arg3: memref<32x128xf32, #tpu.memory_space<vmem>>, %arg4: memref<1x128xf32, #tpu.memory_space<vmem>>, %arg5: memref<3x144x64xf32, #tpu.memory_space<vmem>>, %arg6: memref<3x72x64xf32, #tpu.memory_space<vmem>>, %arg7: memref<1x64xf32, #tpu.memory_space<vmem>>, %arg8: memref<1x64xf32, #tpu.memory_space<vmem>>, %arg9: memref<1x16x64xf32, #tpu.memory_space<vmem>>, %arg10: memref<18x144xf32, #tpu.memory_space<vmem>>, %arg11: memref<18x72xf32, #tpu.memory_space<vmem>>) attributes {dimension_semantics = [#tpu.dimension_semantics<parallel>], iteration_bounds = array<i64: 2>, scalar_prefetch = 0 : i64, scratch_operands = 2 : i64, tpu.core_type = #tpu.core_type<tc>, window_params = [{transform_indices = @transform_0, window_bounds = array<i64: 1, 8, 32>}, {transform_indices = @transform_1, window_bounds = array<i64: 1, 16, 64>}, {pipeline_mode = #tpu.pipeline_mode<synchronous>, transform_indices = @transform_2, window_bounds = array<i64: 32, 128>}, {pipeline_mode = #tpu.pipeline_mode<synchronous>, transform_indices = @transform_3, window_bounds = array<i64: 1, 128>}, {pipeline_mode = #tpu.pipeline_mode<synchronous>, transform_indices = @transform_4, window_bounds = array<i64: 3, 144, 64>}, {pipeline_mode = #tpu.pipeline_mode<synchronous>, transform_indices = @transform_5, window_bounds = array<i64: 3, 72, 64>}, {pipeline_mode = #tpu.pipeline_mode<synchronous>, transform_indices = @transform_6, window_bounds = array<i64: 1, 64>}, {pipeline_mode = #tpu.pipeline_mode<synchronous>, transform_indices = @transform_7, window_bounds = array<i64: 1, 64>}, {transform_indices = @transform_8, window_bounds = array<i64: 1, 16, 64>}]} {
    %c0 = arith.constant 0 : index
    %c0_0 = arith.constant 0 : index
    %c0_1 = arith.constant 0 : index
    %0 = vector.load %arg1[%c0, %c0_0, %c0_1] : memref<1x8x32xf32, #tpu.memory_space<vmem>>, vector<1x8x32xf32>
    %1 = vector.shape_cast %0 : vector<1x8x32xf32> to vector<8x32xf32>
    %c0_2 = arith.constant 0 : index
    %c0_3 = arith.constant 0 : index
    %2 = vector.load %arg3[%c0_2, %c0_3] : memref<32x128xf32, #tpu.memory_space<vmem>>, vector<32x128xf32>
    %cst = arith.constant dense<0.000000e+00> : vector<8x128xf32>
    %3 = tpu.matmul %1, %2, %cst {dimension_numbers = #tpu.dot_dimension_numbers<[1], [0], [0], [1], [0, 0, 1, 1], [], []>} : vector<8x32xf32>, vector<32x128xf32>, vector<8x128xf32> -> vector<8x128xf32>
    %c0_4 = arith.constant 0 : index
    %c0_5 = arith.constant 0 : index
    %4 = vector.load %arg4[%c0_4, %c0_5] : memref<1x128xf32, #tpu.memory_space<vmem>>, vector<1x128xf32>
    %5 = vector.broadcast %4 : vector<1x128xf32> to vector<8x128xf32>
    %6 = arith.addf %3, %5 : vector<8x128xf32>
    %7 = vector.extract_strided_slice %6 {offsets = [0, 0], sizes = [8, 64], strides = [1, 1]} : vector<8x128xf32> to vector<8x64xf32>
    %8 = vector.extract_strided_slice %6 {offsets = [0, 64], sizes = [8, 64], strides = [1, 1]} : vector<8x128xf32> to vector<8x64xf32>
    %cst_6 = arith.constant 0.000000e+00 : f32
    %9 = vector.broadcast %cst_6 : f32 to vector<18x144xf32>
    %c0_7 = arith.constant 0 : index
    %c0_8 = arith.constant 0 : index
    %10 = vector.load %arg10[%c0_7, %c0_8] : memref<18x144xf32, #tpu.memory_space<vmem>>, vector<18x144xf32>
    tpu.vector_store %arg10[%c0_7, %c0_8], %9 {strides = array<i32>} : memref<18x144xf32, #tpu.memory_space<vmem>>, vector<18x144xf32>,
    %c0_9 = arith.constant 0 : index
    %c0_10 = arith.constant 0 : index
    %c0_11 = arith.constant 0 : index
    %11 = vector.load %arg2[%c0_9, %c0_10, %c0_11] : memref<1x16x64xf32, #tpu.memory_space<vmem>>, vector<1x16x64xf32>
    %12 = vector.shape_cast %11 : vector<1x16x64xf32> to vector<16x64xf32>
    %c1 = arith.constant 1 : index
    %c4 = arith.constant 4 : index
    %13 = vector.load %arg10[%c1, %c4] : memref<18x144xf32, #tpu.memory_space<vmem>>, vector<16x64xf32>
    tpu.vector_store %arg10[%c1, %c4], %12 {strides = array<i32>} : memref<18x144xf32, #tpu.memory_space<vmem>>, vector<16x64xf32>,
    %14 = vector.extract_strided_slice %7 {offsets = [0, 0], sizes = [1, 64], strides = [1, 1]} : vector<8x64xf32> to vector<1x64xf32>
    %c1_12 = arith.constant 1 : index
    %c76 = arith.constant 76 : index
    %15 = vector.load %arg10[%c1_12, %c76] : memref<18x144xf32, #tpu.memory_space<vmem>>, vector<1x64xf32>
    tpu.vector_store %arg10[%c1_12, %c76], %14 {strides = array<i32>} : memref<18x144xf32, #tpu.memory_space<vmem>>, vector<1x64xf32>,
    %16 = vector.extract_strided_slice %8 {offsets = [0, 0], sizes = [1, 64], strides = [1, 1]} : vector<8x64xf32> to vector<1x64xf32>
    %c2 = arith.constant 2 : index
    %c76_13 = arith.constant 76 : index
    %17 = vector.load %arg10[%c2, %c76_13] : memref<18x144xf32, #tpu.memory_space<vmem>>, vector<1x64xf32>
    tpu.vector_store %arg10[%c2, %c76_13], %16 {strides = array<i32>} : memref<18x144xf32, #tpu.memory_space<vmem>>, vector<1x64xf32>,
    %18 = vector.extract_strided_slice %7 {offsets = [1, 0], sizes = [1, 64], strides = [1, 1]} : vector<8x64xf32> to vector<1x64xf32>
    %c3 = arith.constant 3 : index
    %c76_14 = arith.constant 76 : index
    %19 = vector.load %arg10[%c3, %c76_14] : memref<18x144xf32, #tpu.memory_space<vmem>>, vector<1x64xf32>
    tpu.vector_store %arg10[%c3, %c76_14], %18 {strides = array<i32>} : memref<18x144xf32, #tpu.memory_space<vmem>>, vector<1x64xf32>,
    %20 = vector.extract_strided_slice %8 {offsets = [1, 0], sizes = [1, 64], strides = [1, 1]} : vector<8x64xf32> to vector<1x64xf32>
    %c4_15 = arith.constant 4 : index
    %c76_16 = arith.constant 76 : index
    %21 = vector.load %arg10[%c4_15, %c76_16] : memref<18x144xf32, #tpu.memory_space<vmem>>, vector<1x64xf32>
    tpu.vector_store %arg10[%c4_15, %c76_16], %20 {strides = array<i32>} : memref<18x144xf32, #tpu.memory_space<vmem>>, vector<1x64xf32>,
    %22 = vector.extract_strided_slice %7 {offsets = [2, 0], sizes = [1, 64], strides = [1, 1]} : vector<8x64xf32> to vector<1x64xf32>
    %c5 = arith.constant 5 : index
    %c76_17 = arith.constant 76 : index
    %23 = vector.load %arg10[%c5, %c76_17] : memref<18x144xf32, #tpu.memory_space<vmem>>, vector<1x64xf32>
    tpu.vector_store %arg10[%c5, %c76_17], %22 {strides = array<i32>} : memref<18x144xf32, #tpu.memory_space<vmem>>, vector<1x64xf32>,
    %24 = vector.extract_strided_slice %8 {offsets = [2, 0], sizes = [1, 64], strides = [1, 1]} : vector<8x64xf32> to vector<1x64xf32>
    %c6 = arith.constant 6 : index
    %c76_18 = arith.constant 76 : index
    %25 = vector.load %arg10[%c6, %c76_18] : memref<18x144xf32, #tpu.memory_space<vmem>>, vector<1x64xf32>
    tpu.vector_store %arg10[%c6, %c76_18], %24 {strides = array<i32>} : memref<18x144xf32, #tpu.memory_space<vmem>>, vector<1x64xf32>,
    %26 = vector.extract_strided_slice %7 {offsets = [3, 0], sizes = [1, 64], strides = [1, 1]} : vector<8x64xf32> to vector<1x64xf32>
    %c7 = arith.constant 7 : index
    %c76_19 = arith.constant 76 : index
    %27 = vector.load %arg10[%c7, %c76_19] : memref<18x144xf32, #tpu.memory_space<vmem>>, vector<1x64xf32>
    tpu.vector_store %arg10[%c7, %c76_19], %26 {strides = array<i32>} : memref<18x144xf32, #tpu.memory_space<vmem>>, vector<1x64xf32>,
    %28 = vector.extract_strided_slice %8 {offsets = [3, 0], sizes = [1, 64], strides = [1, 1]} : vector<8x64xf32> to vector<1x64xf32>
    %c8 = arith.constant 8 : index
    %c76_20 = arith.constant 76 : index
    %29 = vector.load %arg10[%c8, %c76_20] : memref<18x144xf32, #tpu.memory_space<vmem>>, vector<1x64xf32>
    tpu.vector_store %arg10[%c8, %c76_20], %28 {strides = array<i32>} : memref<18x144xf32, #tpu.memory_space<vmem>>, vector<1x64xf32>,
    %30 = vector.extract_strided_slice %7 {offsets = [4, 0], sizes = [1, 64], strides = [1, 1]} : vector<8x64xf32> to vector<1x64xf32>
    %c9 = arith.constant 9 : index
    %c76_21 = arith.constant 76 : index
    %31 = vector.load %arg10[%c9, %c76_21] : memref<18x144xf32, #tpu.memory_space<vmem>>, vector<1x64xf32>
    tpu.vector_store %arg10[%c9, %c76_21], %30 {strides = array<i32>} : memref<18x144xf32, #tpu.memory_space<vmem>>, vector<1x64xf32>,
    %32 = vector.extract_strided_slice %8 {offsets = [4, 0], sizes = [1, 64], strides = [1, 1]} : vector<8x64xf32> to vector<1x64xf32>
    %c10 = arith.constant 10 : index
    %c76_22 = arith.constant 76 : index
    %33 = vector.load %arg10[%c10, %c76_22] : memref<18x144xf32, #tpu.memory_space<vmem>>, vector<1x64xf32>
    tpu.vector_store %arg10[%c10, %c76_22], %32 {strides = array<i32>} : memref<18x144xf32, #tpu.memory_space<vmem>>, vector<1x64xf32>,
    %34 = vector.extract_strided_slice %7 {offsets = [5, 0], sizes = [1, 64], strides = [1, 1]} : vector<8x64xf32> to vector<1x64xf32>
    %c11 = arith.constant 11 : index
    %c76_23 = arith.constant 76 : index
    %35 = vector.load %arg10[%c11, %c76_23] : memref<18x144xf32, #tpu.memory_space<vmem>>, vector<1x64xf32>
    tpu.vector_store %arg10[%c11, %c76_23], %34 {strides = array<i32>} : memref<18x144xf32, #tpu.memory_space<vmem>>, vector<1x64xf32>,
    %36 = vector.extract_strided_slice %8 {offsets = [5, 0], sizes = [1, 64], strides = [1, 1]} : vector<8x64xf32> to vector<1x64xf32>
    %c12 = arith.constant 12 : index
    %c76_24 = arith.constant 76 : index
    %37 = vector.load %arg10[%c12, %c76_24] : memref<18x144xf32, #tpu.memory_space<vmem>>, vector<1x64xf32>
    tpu.vector_store %arg10[%c12, %c76_24], %36 {strides = array<i32>} : memref<18x144xf32, #tpu.memory_space<vmem>>, vector<1x64xf32>,
    %38 = vector.extract_strided_slice %7 {offsets = [6, 0], sizes = [1, 64], strides = [1, 1]} : vector<8x64xf32> to vector<1x64xf32>
    %c13 = arith.constant 13 : index
    %c76_25 = arith.constant 76 : index
    %39 = vector.load %arg10[%c13, %c76_25] : memref<18x144xf32, #tpu.memory_space<vmem>>, vector<1x64xf32>
    tpu.vector_store %arg10[%c13, %c76_25], %38 {strides = array<i32>} : memref<18x144xf32, #tpu.memory_space<vmem>>, vector<1x64xf32>,
    %40 = vector.extract_strided_slice %8 {offsets = [6, 0], sizes = [1, 64], strides = [1, 1]} : vector<8x64xf32> to vector<1x64xf32>
    %c14 = arith.constant 14 : index
    %c76_26 = arith.constant 76 : index
    %41 = vector.load %arg10[%c14, %c76_26] : memref<18x144xf32, #tpu.memory_space<vmem>>, vector<1x64xf32>
    tpu.vector_store %arg10[%c14, %c76_26], %40 {strides = array<i32>} : memref<18x144xf32, #tpu.memory_space<vmem>>, vector<1x64xf32>,
    %42 = vector.extract_strided_slice %7 {offsets = [7, 0], sizes = [1, 64], strides = [1, 1]} : vector<8x64xf32> to vector<1x64xf32>
    %c15 = arith.constant 15 : index
    %c76_27 = arith.constant 76 : index
    %43 = vector.load %arg10[%c15, %c76_27] : memref<18x144xf32, #tpu.memory_space<vmem>>, vector<1x64xf32>
    tpu.vector_store %arg10[%c15, %c76_27], %42 {strides = array<i32>} : memref<18x144xf32, #tpu.memory_space<vmem>>, vector<1x64xf32>,
    %44 = vector.extract_strided_slice %8 {offsets = [7, 0], sizes = [1, 64], strides = [1, 1]} : vector<8x64xf32> to vector<1x64xf32>
    %c16 = arith.constant 16 : index
    %c76_28 = arith.constant 76 : index
    %45 = vector.load %arg10[%c16, %c76_28] : memref<18x144xf32, #tpu.memory_space<vmem>>, vector<1x64xf32>
    tpu.vector_store %arg10[%c16, %c76_28], %44 {strides = array<i32>} : memref<18x144xf32, #tpu.memory_space<vmem>>, vector<1x64xf32>,
    %c0_29 = arith.constant 0 : index
    %c0_30 = arith.constant 0 : index
    %46 = vector.load %arg10[%c0_29, %c0_30] : memref<18x144xf32, #tpu.memory_space<vmem>>, vector<16x144xf32>
    %c0_31 = arith.constant 0 : index
    %c0_32 = arith.constant 0 : index
    %c0_33 = arith.constant 0 : index
    %47 = vector.load %arg5[%c0_31, %c0_32, %c0_33] : memref<3x144x64xf32, #tpu.memory_space<vmem>>, vector<1x144x64xf32>
    %48 = vector.shape_cast %47 : vector<1x144x64xf32> to vector<144x64xf32>
    %cst_34 = arith.constant dense<0.000000e+00> : vector<16x64xf32>
    %49 = tpu.matmul %46, %48, %cst_34 {dimension_numbers = #tpu.dot_dimension_numbers<[1], [0], [0], [1], [0, 0, 1, 1], [], []>} : vector<16x144xf32>, vector<144x64xf32>, vector<16x64xf32> -> vector<16x64xf32>
    %c1_35 = arith.constant 1 : index
    %c0_36 = arith.constant 0 : index
    %50 = vector.load %arg10[%c1_35, %c0_36] : memref<18x144xf32, #tpu.memory_space<vmem>>, vector<16x144xf32>
    %c1_37 = arith.constant 1 : index
    %c0_38 = arith.constant 0 : index
    %c0_39 = arith.constant 0 : index
    %51 = vector.load %arg5[%c1_37, %c0_38, %c0_39] : memref<3x144x64xf32, #tpu.memory_space<vmem>>, vector<1x144x64xf32>
    %52 = vector.shape_cast %51 : vector<1x144x64xf32> to vector<144x64xf32>
    %cst_40 = arith.constant dense<0.000000e+00> : vector<16x64xf32>
    %53 = tpu.matmul %50, %52, %cst_40 {dimension_numbers = #tpu.dot_dimension_numbers<[1], [0], [0], [1], [0, 0, 1, 1], [], []>} : vector<16x144xf32>, vector<144x64xf32>, vector<16x64xf32> -> vector<16x64xf32>
    %54 = arith.addf %49, %53 : vector<16x64xf32>
    %c2_41 = arith.constant 2 : index
    %c0_42 = arith.constant 0 : index
    %55 = vector.load %arg10[%c2_41, %c0_42] : memref<18x144xf32, #tpu.memory_space<vmem>>, vector<16x144xf32>
    %c2_43 = arith.constant 2 : index
    %c0_44 = arith.constant 0 : index
    %c0_45 = arith.constant 0 : index
    %56 = vector.load %arg5[%c2_43, %c0_44, %c0_45] : memref<3x144x64xf32, #tpu.memory_space<vmem>>, vector<1x144x64xf32>
    %57 = vector.shape_cast %56 : vector<1x144x64xf32> to vector<144x64xf32>
    %cst_46 = arith.constant dense<0.000000e+00> : vector<16x64xf32>
    %58 = tpu.matmul %55, %57, %cst_46 {dimension_numbers = #tpu.dot_dimension_numbers<[1], [0], [0], [1], [0, 0, 1, 1], [], []>} : vector<16x144xf32>, vector<144x64xf32>, vector<16x64xf32> -> vector<16x64xf32>
    %59 = arith.addf %54, %58 : vector<16x64xf32>
    %c0_47 = arith.constant 0 : index
    %c0_48 = arith.constant 0 : index
    %60 = vector.load %arg7[%c0_47, %c0_48] : memref<1x64xf32, #tpu.memory_space<vmem>>, vector<1x64xf32>
    %61 = vector.broadcast %60 : vector<1x64xf32> to vector<16x64xf32>
    %62 = arith.addf %59, %61 : vector<16x64xf32>
    %cst_49 = arith.constant 0.000000e+00 : f32
    %63 = vector.broadcast %cst_49 : f32 to vector<16x64xf32>
    %64 = arith.maximumf %62, %63 : vector<16x64xf32>
    %cst_50 = arith.constant 0.000000e+00 : f32
    %65 = vector.broadcast %cst_50 : f32 to vector<18x72xf32>
    %c0_51 = arith.constant 0 : index
    %c0_52 = arith.constant 0 : index
    %66 = vector.load %arg11[%c0_51, %c0_52] : memref<18x72xf32, #tpu.memory_space<vmem>>, vector<18x72xf32>
    tpu.vector_store %arg11[%c0_51, %c0_52], %65 {strides = array<i32>} : memref<18x72xf32, #tpu.memory_space<vmem>>, vector<18x72xf32>,
    %c1_53 = arith.constant 1 : index
    %c4_54 = arith.constant 4 : index
    %67 = vector.load %arg11[%c1_53, %c4_54] : memref<18x72xf32, #tpu.memory_space<vmem>>, vector<16x64xf32>
    tpu.vector_store %arg11[%c1_53, %c4_54], %64 {strides = array<i32>} : memref<18x72xf32, #tpu.memory_space<vmem>>, vector<16x64xf32>,
    %c0_55 = arith.constant 0 : index
    %c0_56 = arith.constant 0 : index
    %68 = vector.load %arg11[%c0_55, %c0_56] : memref<18x72xf32, #tpu.memory_space<vmem>>, vector<16x72xf32>
    %c0_57 = arith.constant 0 : index
    %c0_58 = arith.constant 0 : index
    %c0_59 = arith.constant 0 : index
    %69 = vector.load %arg6[%c0_57, %c0_58, %c0_59] : memref<3x72x64xf32, #tpu.memory_space<vmem>>, vector<1x72x64xf32>
    %70 = vector.shape_cast %69 : vector<1x72x64xf32> to vector<72x64xf32>
    %cst_60 = arith.constant dense<0.000000e+00> : vector<16x64xf32>
    %71 = tpu.matmul %68, %70, %cst_60 {dimension_numbers = #tpu.dot_dimension_numbers<[1], [0], [0], [1], [0, 0, 1, 1], [], []>} : vector<16x72xf32>, vector<72x64xf32>, vector<16x64xf32> -> vector<16x64xf32>
    %c1_61 = arith.constant 1 : index
    %c0_62 = arith.constant 0 : index
    %72 = vector.load %arg11[%c1_61, %c0_62] : memref<18x72xf32, #tpu.memory_space<vmem>>, vector<16x72xf32>
    %c1_63 = arith.constant 1 : index
    %c0_64 = arith.constant 0 : index
    %c0_65 = arith.constant 0 : index
    %73 = vector.load %arg6[%c1_63, %c0_64, %c0_65] : memref<3x72x64xf32, #tpu.memory_space<vmem>>, vector<1x72x64xf32>
    %74 = vector.shape_cast %73 : vector<1x72x64xf32> to vector<72x64xf32>
    %cst_66 = arith.constant dense<0.000000e+00> : vector<16x64xf32>
    %75 = tpu.matmul %72, %74, %cst_66 {dimension_numbers = #tpu.dot_dimension_numbers<[1], [0], [0], [1], [0, 0, 1, 1], [], []>} : vector<16x72xf32>, vector<72x64xf32>, vector<16x64xf32> -> vector<16x64xf32>
    %76 = arith.addf %71, %75 : vector<16x64xf32>
    %c2_67 = arith.constant 2 : index
    %c0_68 = arith.constant 0 : index
    %77 = vector.load %arg11[%c2_67, %c0_68] : memref<18x72xf32, #tpu.memory_space<vmem>>, vector<16x72xf32>
    %c2_69 = arith.constant 2 : index
    %c0_70 = arith.constant 0 : index
    %c0_71 = arith.constant 0 : index
    %78 = vector.load %arg6[%c2_69, %c0_70, %c0_71] : memref<3x72x64xf32, #tpu.memory_space<vmem>>, vector<1x72x64xf32>
    %79 = vector.shape_cast %78 : vector<1x72x64xf32> to vector<72x64xf32>
    %cst_72 = arith.constant dense<0.000000e+00> : vector<16x64xf32>
    %80 = tpu.matmul %77, %79, %cst_72 {dimension_numbers = #tpu.dot_dimension_numbers<[1], [0], [0], [1], [0, 0, 1, 1], [], []>} : vector<16x72xf32>, vector<72x64xf32>, vector<16x64xf32> -> vector<16x64xf32>
    %81 = arith.addf %76, %80 : vector<16x64xf32>
    %c0_73 = arith.constant 0 : index
    %c0_74 = arith.constant 0 : index
    %82 = vector.load %arg8[%c0_73, %c0_74] : memref<1x64xf32, #tpu.memory_space<vmem>>, vector<1x64xf32>
    %83 = vector.broadcast %82 : vector<1x64xf32> to vector<16x64xf32>
    %84 = arith.addf %81, %83 : vector<16x64xf32>
    %cst_75 = arith.constant 0.000000e+00 : f32
    %85 = vector.broadcast %cst_75 : f32 to vector<16x64xf32>
    %86 = arith.maximumf %84, %85 : vector<16x64xf32>
    %c0_76 = arith.constant 0 : index
    %c0_77 = arith.constant 0 : index
    %c0_78 = arith.constant 0 : index
    %87 = vector.load %arg9[%c0_76, %c0_77, %c0_78] : memref<1x16x64xf32, #tpu.memory_space<vmem>>, vector<1x16x64xf32>
    %88 = vector.shape_cast %87 : vector<1x16x64xf32> to vector<16x64xf32>
    %89 = vector.shape_cast %86 : vector<16x64xf32> to vector<1x16x64xf32>
    tpu.vector_store %arg9[%c0_76, %c0_77, %c0_78], %89 {strides = array<i32>} : memref<1x16x64xf32, #tpu.memory_space<vmem>>, vector<1x16x64xf32>,
    return
  }
  func.func @transform_0(%arg0: i32) -> (i32, i32, i32) {
    %c0_i32 = arith.constant 0 : i32
    %c0_i32_0 = arith.constant 0 : i32
    %c0_i32_1 = arith.constant 0 : i32
    return %arg0, %c0_i32, %c0_i32_0 : i32, i32, i32
  }
  func.func @transform_1(%arg0: i32) -> (i32, i32, i32) {
    %c0_i32 = arith.constant 0 : i32
    %c0_i32_0 = arith.constant 0 : i32
    %c0_i32_1 = arith.constant 0 : i32
    return %arg0, %c0_i32, %c0_i32_0 : i32, i32, i32
  }
  func.func @transform_2(%arg0: i32) -> (i32, i32) {
    %c0_i32 = arith.constant 0 : i32
    %c0_i32_0 = arith.constant 0 : i32
    %c0_i32_1 = arith.constant 0 : i32
    return %c0_i32, %c0_i32_0 : i32, i32
  }
  func.func @transform_3(%arg0: i32) -> (i32, i32) {
    %c0_i32 = arith.constant 0 : i32
    %c0_i32_0 = arith.constant 0 : i32
    %c0_i32_1 = arith.constant 0 : i32
    return %c0_i32, %c0_i32_0 : i32, i32
  }
  func.func @transform_4(%arg0: i32) -> (i32, i32, i32) {
    %c0_i32 = arith.constant 0 : i32
    %c0_i32_0 = arith.constant 0 : i32
    %c0_i32_1 = arith.constant 0 : i32
    %c0_i32_2 = arith.constant 0 : i32
    return %c0_i32, %c0_i32_0, %c0_i32_1 : i32, i32, i32
  }
  func.func @transform_5(%arg0: i32) -> (i32, i32, i32) {
    %c0_i32 = arith.constant 0 : i32
    %c0_i32_0 = arith.constant 0 : i32
    %c0_i32_1 = arith.constant 0 : i32
    %c0_i32_2 = arith.constant 0 : i32
    return %c0_i32, %c0_i32_0, %c0_i32_1 : i32, i32, i32
  }
  func.func @transform_6(%arg0: i32) -> (i32, i32) {
    %c0_i32 = arith.constant 0 : i32
    %c0_i32_0 = arith.constant 0 : i32
    %c0_i32_1 = arith.constant 0 : i32
    return %c0_i32, %c0_i32_0 : i32, i32
  }
  func.func @transform_7(%arg0: i32) -> (i32, i32) {
    %c0_i32 = arith.constant 0 : i32
    %c0_i32_0 = arith.constant 0 : i32
    %c0_i32_1 = arith.constant 0 : i32
    return %c0_i32, %c0_i32_0 : i32, i32
  }
  func.func @transform_8(%arg0: i32) -> (i32, i32, i32) {
    %c0_i32 = arith.constant 0 : i32
    %c0_i32_0 = arith.constant 0 : i32
    %c0_i32_1 = arith.constant 0 : i32
    return %arg0, %c0_i32, %c0_i32_0 : i32, i32, i32
  }
}

</mosaic_0001>

<bundles_post_ra>
// kernel: tpu_custom_call.1
= control target key start
LH: loop header
LB: loop body
LE: loop exit
PB: predicated region body
PF: predicated region fallthrough
CT: control target
= control target key end

     0   :  { %13 = vsyncpa [#allocation5], 0  ;;  %s1717_s0 = inlined_call_operand.vmem [shape: f32[2,8,32], index: 0, kind: input, shape index: {}]   ;;  %s1718_s1 = inlined_call_operand.vmem [shape: f32[2,16,64], index: 1, kind: input, shape index: {}]   ;;  %s1719_s2 = inlined_call_operand.vmem [shape: f32[32,128], index: 2, kind: input, shape index: {}]   ;;  %s1720_s3 = inlined_call_operand.vmem [shape: f32[1,128], index: 3, kind: input, shape index: {}]   ;;  %s1721_s4 = inlined_call_operand.vmem [shape: f32[3,144,64], index: 4, kind: input, shape index: {}]   ;;  %s1722_s5 = inlined_call_operand.vmem [shape: f32[3,72,64], index: 5, kind: input, shape index: {}]   ;;  %s1723_s6 = inlined_call_operand.vmem [shape: f32[1,64], index: 6, kind: input, shape index: {}]   ;;  %s1724_s7 = inlined_call_operand.vmem [shape: f32[1,64], index: 7, kind: input, shape index: {}]   ;;  %s1725_s8 = inlined_call_operand.hbm [shape: f32[2,16,64], index: 8, kind: output, shape index: {}]  }
   0x1   :  { %15 = vsyncpa [#allocation5 + $0x1], 0  ;;  %s1234_s27 = smov 0   ;;  %s1236_s28 = smov 0  }
   0x2   :  { %s1238_s29 = smov 0   ;;  %s1240_s30 = smov 0  }
   0x3 LB: > { %s1255_s9 = sadd.s32 4294967295, %s1181_s30   ;;  %s980_s10 = sadd.s32 4294967294, %s1181_s30   ;;  %s1181_s30 = sphi %s1240_s30, %s1731_s30   ;;  %s1177_s29 = sphi %s1238_s29, %s1730_s29   ;;  %s1173_s28 = sphi %s1236_s28, %s1729_s28   ;;  %s1169_s27 = sphi %s1234_s27, %s1728_s27  }
   0x4   : > { %s1259_s11 = sadd.s32 1, %s1181_s30   ;;  %s206_s12 = sadd.s32 1, %s1177_s29 }
   0x5   : > { %s203_s13 = ssub.s32 %s1181_s30, %s1259_s11  ;;  %p216_p0 = scmp.ne.s32.totalorder %s1177_s29, %s1173_s28 }
   0x6   : > { %p204_p1 = scmp.eq.s32.totalorder %s203_s13, 0  ;;  %p217_p2 = scmp.eq.s32.totalorder %s1255_s9, 1 }
   0x7   : > { %p222_p3 = scmp.ne.s32.totalorder %s1173_s28, %s1169_s27  ;;  %p223_p4 = scmp.eq.s32.totalorder %s980_s10, 1 }
   0x8   : > { %s1270_s14 = scalar_select %p204_p1, %s1177_s29, %s206_s12  }
   0x9   : > { %p1272_p5 = por %p217_p2, %p216_p0  ;;  %p1276_p6 = por %p223_p4, %p222_p3 }
   0xa   : > { %p983_p7 = scmp.ge.s32.totalorder %s1181_s30, 1  ;;  %p274_p8 = scmp.lt.s32.totalorder %s1181_s30, 3 }
   0xc   : > { %p275_p9 = pnand %p983_p7, %p274_p8 }
   0xd   : > { %p312_p10 = scmp.lt.s32.totalorder (!%p275_p9), %s1255_s9, 1  ;;  %s1183_s19 = smov (!%p275_p9), 76  }
   0xe   : > { %278 = sbr.rel (%p275_p9) target bundleno = 747 (0x2eb), region = 52  ;;  %s1184_s20 = smov (!%p275_p9), 12  }
   0xf   : > { %s309_s18 = sand.u32 (!%p275_p9), 1, %s1173_s28  }
  0x13   : > { %v325_v0 = vld [vmem:[%s1719_s2 + $0x18] sm:$0xff]  ;;  %v324_v1 = vld [vmem:[%s1719_s2 + $0x10] sm:$0xff]  ;;  %v323_v2 = vld [vmem:[%s1719_s2 + $0x8] sm:$0xff]  ;;  %s1293_s23 = scalar_select %p312_p10, %s1255_s9, 1  ;;  %vm330_vm0 = vcmask 261120   ;;  %vm355_vm1 = vcmask 130048  }
  0x14   : > { %346 = vmatpush.msra.mxu0 %v325_v0  ;;  %v322_v3 = vld [vmem:[%s1719_s2] sm:$0xff]  ;;  %v1185_v12 = vmov 0.0   ;;  %vm366_vm2 = vcmask 1040384   ;;  %vm391_vm3 = vcmask 90112   ;;  %v494_v23 = vld [vmem:[%s1721_s4 + $0x78] sm:$0xff]  ;;  %v496_v24 = vld [vmem:[%s1721_s4 + $0x88] sm:$0xff] }
  0x15   : > { %s985_s26 = sshll.u32 %s1293_s23, 3  ;;  %v1116_v5 = vld [vmem:[%s1720_s3] ss:$0 sm:$0xff]  ;;  %356 = vst.msk [vmem:[#allocation2 + $0x8] sm:$0xff] %vm355_vm1, %v1185_v12  ;;  %s1060_s21 = sshll.u32 %s1293_s23, 4  ;;  %v493_v25 = vld [vmem:[%s1721_s4 + $0x70] sm:$0xff]  ;;  %594 = vmatpush.msra.mxu3 %v494_v23 }
  0x16   : > { %347 = vmatpush.msra.mxu0 %v324_v1  ;;  %s315_s13 = scalar_lea.vmem %s1717_s0, %s985_s26  ;;  %354 = vst [vmem:[#allocation2] sm:$0xff] %v1185_v12  ;;  %s320_s25 = scalar_lea.vmem %s1718_s1, %s1060_s21  ;;  %v1004_v26 = vld [vmem:[%s1721_s4 + $0x108] sm:$0xff]  ;;  %v495_v27 = vld [vmem:[%s1721_s4 + $0x80] sm:$0xff]  ;;  %v1002_v32 = vld [vmem:[%s1721_s4 + $0xf8] sm:$0xff]  ;;  %vm360_vm4 = vcmask 123904   ;;  %vm381_vm5 = vcmask 556064  }
  0x17   : > { %v321_v4 = vld [vmem:[%s315_s13] sm:$0xff]  ;;  %357 = vst [vmem:[#allocation2 + $0x10] sm:$0xff] %v1185_v12  ;;  %v363_v17 = vld [vmem:[%s320_s25 + $0x8] sm:$0xff]  ;;  %s1186_s23 = smov 4   ;;  %543 = vmatpush.msra.mxu1 %v1004_v26  ;;  %595 = vmatpush.msra.mxu3 %v493_v25  ;;  %v1006_v33 = vld [vmem:[%s1721_s4 + $0x118] sm:$0xff]  ;;  %vm389_vm6 = vcmask 1040992  }
  0x18   : > { %348 = vmatpush.msra.mxu0 %v323_v2  ;;  %358 = vst.msk [vmem:[#allocation2 + $0x18] sm:$0xff] %vm355_vm1, %v1185_v12  ;;  %v362_v16 = vld [vmem:[%s320_s25] sm:$0xff]  ;;  %v368_v19 = vrot.slane %v363_v17, 7  ;;  %v492_v29 = vld [vmem:[%s1721_s4 + $0x68] sm:$0xff]  ;;  %580 = vmatpush.msra.mxu2 %v1006_v33  ;;  %v1001_v34 = vld [vmem:[%s1721_s4 + $0xf0] sm:$0xff]  ;;  %vm379_vm7 = vcmask 556065  }
  0x19   : > { %359 = vst [vmem:[#allocation2 + $0x20] sm:$0x3] %v1185_v12  ;;  %v367_v18 = vrot.slane %v362_v16, 7  ;;  %v1003_v30 = vld [vmem:[%s1721_s4 + $0x100] sm:$0xff]  ;;  %596 = vmatpush.msra.mxu3 %v492_v29  ;;  %v1005_v35 = vld [vmem:[%s1721_s4 + $0x110] sm:$0xff]  ;;  %v490_v36 = vld [vmem:[%s1721_s4 + $0x58] sm:$0xff] }
  0x1a   : > { %349 = vmatpush.msra.mxu0 %v322_v3  ;;  %544 = vmatpush.msra.mxu1 %v1003_v30  ;;  %v491_v31 = vld [vmem:[%s1721_s4 + $0x60] sm:$0xff]  ;;  %v1026_v37 = vld [vmem:[%s1721_s4 + $0x198] sm:$0xff]  ;;  %v1000_v38 = vld [vmem:[%s1721_s4 + $0xe8] sm:$0xff]  ;;  %361 = vst.msk [vmem:[#allocation2 + $0x28] sm:$0x3] %vm360_vm4, %v1185_v12  ;;  %vm526_vm8 = vcmask 1046528  }
  0x1b   : > { %988 = vmatmul.msk.f32.vlgmr.msra.gmra.mxu0 %vm330_vm0, %v321_v4  ;;  %v369_v20 = vsel %vm366_vm2, %v367_v18, %v368_v19  ;;  %597 = vmatpush.msra.mxu3 %v491_v31  ;;  %v489_v40 = vld [vmem:[%s1721_s4 + $0x50] sm:$0xff]  ;;  %v488_v43 = vld [vmem:[%s1721_s4 + $0x48] sm:$0xff]  ;;  %v999_v45 = vld [vmem:[%s1721_s4 + $0xe0] sm:$0xff]  ;;  %vm383_vm9 = vcmask 548896   ;;  %vm667_vm10 = vcmask 1045504   ;;  %vm740_vm11 = vcmask 588800  }
  0x1c   : > { %631 = vmatpush.msrb.mxu0 %v496_v24  ;;  %545 = vmatpush.msra.mxu1 %v1002_v32  ;;  %v1025_v44 = vld [vmem:[%s1721_s4 + $0x190] sm:$0xff]  ;;  %v487_v46 = vld [vmem:[%s1721_s4 + $0x40] sm:$0xff]  ;;  %v1024_v47 = vld [vmem:[%s1721_s4 + $0x188] sm:$0xff]  ;;  %vm743_vm12 = vcmask 582656   ;;  %742 = vst.msk [vmem:[#allocation3 + $0x8] sm:$0xff] %vm740_vm11, %v1185_v12  ;;  %s984_s21 = sshll.u32 %s309_s18, 4 }
  0x1d   : > { %581 = vmatpush.msra.mxu2 %v1005_v35  ;;  %598 = vmatpush.msra.mxu3 %v490_v36  ;;  %v998_v48 = vld [vmem:[%s1721_s4 + $0xd8] sm:$0xff]  ;;  %v1023_v49 = vld [vmem:[%s1721_s4 + $0x180] sm:$0xff]  ;;  %v997_v50 = vld [vmem:[%s1721_s4 + $0xd0] sm:$0xff]  ;;  %744 = vst.msk [vmem:[#allocation3 + $0x10] sm:$0x3] %vm743_vm12, %v1185_v12  ;;  %vm887_vm13 = vcmask 523264  }
  0x1e   : > { %632 = vmatpush.msrb.mxu0 %v495_v27  ;;  %546 = vmatpush.msra.mxu1 %v1001_v34  ;;  %v486_v51 = vld [vmem:[%s1721_s4 + $0x38] sm:$0xff]  ;;  %v996_v53 = vld [vmem:[%s1721_s4 + $0xc8] sm:$0xff]  ;;  %v485_v55 = vld [vmem:[%s1721_s4 + $0x30] sm:$0xff]  ;;  %741 = vst.msk [vmem:[#allocation3] sm:$0xff] %vm740_vm11, %v1185_v12  ;;  %s311_s26 = scalar_lea.vmem [#allocation4], %s984_s21  ;;  %s1139_s21 = scalar_lea.hbm %s1725_s8, 32 }
  0x1f   : > { %684 = vmatpush.msrb.mxu2 %v1026_v37  ;;  %599 = vmatpush.msra.mxu3 %v489_v40  ;;  %v1022_v52 = vld [vmem:[%s1721_s4 + $0x178] sm:$0xff]  ;;  %v1021_v56 = vld [vmem:[%s1721_s4 + $0x170] sm:$0xff]  ;;  %v995_v57 = vld [vmem:[%s1721_s4 + $0xc0] sm:$0xff]  ;;  %s903_s10 = sshll.u32 %s311_s26, 4  ;;  %s904_s10 = int_to_ptr.vmem [resolvable:$true] %s903_s10 }
  0x20   : > { %547 = vmatpush.msra.mxu1 %v1000_v38  ;;  %v484_v60 = vld [vmem:[%s1721_s4 + $0x28] sm:$0xff]  ;;  %v483_v62 = vld [vmem:[%s1721_s4 + $0x20] sm:$0xff]  ;;  %v994_v0 = vld [vmem:[%s1721_s4 + $0xb8] sm:$0xff] }
  0x21   : > { %685 = vmatpush.msrb.mxu2 %v1025_v44  ;;  %600 = vmatpush.msra.mxu3 %v488_v43  ;;  %v1020_v63 = vld [vmem:[%s1721_s4 + $0x168] sm:$0xff]  ;;  %v482_v3 = vld [vmem:[%s1721_s4 + $0x18] sm:$0xff]  ;;  %v1019_v4 = vld [vmem:[%s1721_s4 + $0x160] sm:$0xff] }
  0x22   : > { %548 = vmatpush.msra.mxu1 %v999_v45  ;;  %v1016_v16 = vld [vmem:[%s1721_s4 + $0x148] sm:$0xff]  ;;  %v990_v17 = vld [vmem:[%s1721_s4 + $0x98] sm:$0xff]  ;;  %v1015_v23 = vld [vmem:[%s1721_s4 + $0x140] sm:$0xff] }
  0x23   : > { %686 = vmatpush.msrb.mxu2 %v1024_v47  ;;  %601 = vmatpush.msra.mxu3 %v487_v46  ;;  %v989_v24 = vld [vmem:[%s1721_s4 + $0x90] sm:$0xff]  ;;  %v1014_v25 = vld [vmem:[%s1721_s4 + $0x138] sm:$0xff]  ;;  %v1012_v27 = vld [vmem:[%s1721_s4 + $0x128] sm:$0xff] }
  0x24   : > { %549 = vmatpush.msra.mxu1 %v998_v48  ;;  %v1013_v26 = vld [vmem:[%s1721_s4 + $0x130] sm:$0xff]  ;;  %v1011_v30 = vld [vmem:[%s1721_s4 + $0x120] sm:$0xff] }
  0x25   : > { %687 = vmatpush.msrb.mxu2 %v1023_v49  ;;  %602 = vmatpush.msra.mxu3 %v486_v51 }
  0x26   : > { %550 = vmatpush.msra.mxu1 %v997_v50 }
  0x27   : > { %688 = vmatpush.msrb.mxu2 %v1022_v52  ;;  %603 = vmatpush.msra.mxu3 %v485_v55 }
  0x28   : > { %551 = vmatpush.msra.mxu1 %v996_v53 }
  0x29   : > { %689 = vmatpush.msrb.mxu2 %v1021_v56  ;;  %604 = vmatpush.msra.mxu3 %v484_v60 }
  0x2a   : > { %552 = vmatpush.msra.mxu1 %v995_v57 }
  0x2b   : > { %605 = vmatpush.msra.mxu3 %v483_v62  ;;  %690 = vmatpush.msrb.mxu2 %v1020_v63 }
  0x2c   : > { %553 = vmatpush.msra.mxu1 %v994_v0 }
  0x2d   : > { %606 = vmatpush.msra.mxu3 %v482_v3  ;;  %691 = vmatpush.msrb.mxu2 %v1019_v4  ;;  %v1037_v3 = vld [vmem:[%s1722_s5 + $0x78] sm:$0xff] }
  0x98   : > { %v351_v6 = vpop.f32.mrf.mxu0 }
  0x99   : > { %v352_v7 = vadd.f32 %v1116_v5, %v351_v6  ;;  %v993_v5 = vld [vmem:[%s1721_s4 + $0xb0] sm:$0xff] }
  0x9a   : > { %v481_v6 = vld [vmem:[%s1721_s4 + $0x10] sm:$0xff]  ;;  %554 = vmatpush.msra.mxu1 %v993_v5 }
  0x9b   : > { %386 = vrot.lane.b32.xlu0 %v352_v7, %s1183_s19  ;;  %v409_v8 = vrot.slane %v352_v7, 2  ;;  %v398_v9 = vrot.slane %v352_v7, 1  ;;  %v420_v10 = vrot.slane %v352_v7, 3  ;;  %v431_v11 = vrot.slane %v352_v7, 4  ;;  %607 = vmatpush.msra.mxu3 %v481_v6  ;;  %v1036_v5 = vld [vmem:[%s1722_s5 + $0x70] sm:$0xff]  ;;  %v1035_v6 = vld [vmem:[%s1722_s5 + $0x68] sm:$0xff] }
  0x9c   : > { %v442_v13 = vrot.slane %v352_v7, 5  ;;  %v453_v14 = vrot.slane %v352_v7, 6  ;;  %v464_v15 = vrot.slane %v352_v7, 7 }
  0x9d   : > { %410 = vrot.lane.b32.xlu2 %v409_v8, %s1183_s19  ;;  %399 = vrot.lane.b32.xlu1 %v398_v9, %s1183_s19 }
  0xa3   : > { %393 = vrot.lane.b32.xlu0 %v352_v7, %s1184_s20  ;;  %v1018_v7 = vld [vmem:[%s1721_s4 + $0x158] sm:$0xff] }
  0xa4   : > { %692 = vmatpush.msrb.mxu2 %v1018_v7 }
  0xa5   : > { %415 = vrot.lane.b32.xlu2 %v409_v8, %s1184_s20  ;;  %404 = vrot.lane.b32.xlu1 %v398_v9, %s1184_s20  ;;  %v992_v8 = vld [vmem:[%s1721_s4 + $0xa8] sm:$0xff] }
  0xa6   : > { %v1028_v9 = vld [vmem:[%s1721_s4 + $0x1a8] sm:$0xff]  ;;  %555 = vmatpush.msra.mxu1 %v992_v8 }
  0xa7   : > { %721 = vmatpush.msra.mxu0 %v1028_v9 }
  0xab   : > { %421 = vrot.lane.b32.xlu0 %v420_v10, %s1183_s19 }
  0xad   : > { %432 = vrot.lane.b32.xlu2 %v431_v11, %s1183_s19  ;;  %426 = vrot.lane.b32.xlu1 %v420_v10, %s1184_s20  ;;  %v480_v10 = vld [vmem:[%s1721_s4 + $0x8] sm:$0xff] }
  0xae   : > { %608 = vmatpush.msra.mxu3 %v480_v10 }
  0xb3   : > { %437 = vrot.lane.b32.xlu0 %v431_v11, %s1184_s20  ;;  %v1017_v11 = vld [vmem:[%s1721_s4 + $0x150] sm:$0xff] }
  0xb4   : > { %693 = vmatpush.msrb.mxu2 %v1017_v11 }
  0xb5   : > { %448 = vrot.lane.b32.xlu2 %v442_v13, %s1184_s20  ;;  %443 = vrot.lane.b32.xlu1 %v442_v13, %s1183_s19  ;;  %v991_v13 = vld [vmem:[%s1721_s4 + $0xa0] sm:$0xff] }
  0xb6   : > { %556 = vmatpush.msra.mxu1 %v991_v13  ;;  %694 = vmatpush.msrb.mxu2 %v1016_v16 }
  0xb8   : > { %557 = vmatpush.msra.mxu1 %v990_v17  ;;  %695 = vmatpush.msrb.mxu2 %v1015_v23 }
  0xba   : > { %558 = vmatpush.msra.mxu1 %v989_v24  ;;  %696 = vmatpush.msrb.mxu2 %v1014_v25 }
  0xbb   : > { %454 = vrot.lane.b32.xlu0 %v453_v14, %s1183_s19 }
  0xbc   : > { %697 = vmatpush.msrb.mxu2 %v1013_v26 }
  0xbd   : > { %465 = vrot.lane.b32.xlu2 %v464_v15, %s1183_s19  ;;  %459 = vrot.lane.b32.xlu1 %v453_v14, %s1184_s20  ;;  %v1027_v14 = vld [vmem:[%s1721_s4 + $0x1a0] sm:$0xff] }
  0xbe   : > { %722 = vmatpush.msra.mxu0 %v1027_v14  ;;  %698 = vmatpush.msrb.mxu2 %v1012_v27 }
  0xc0   : > { %699 = vmatpush.msrb.mxu2 %v1011_v30 }
  0xc3   : > { %470 = vrot.lane.b32.xlu0 %v464_v15, %s1184_s20  ;;  %v479_v15 = vld [vmem:[%s1721_s4] sm:$0xff] }
  0xc4   : > { %609 = vmatpush.msra.mxu3 %v479_v15 }
  0xc5   : > { %372 = vrot.lane.b32.xlu2 %v369_v20, %s1186_s23  ;;  %370 = vrot.lane.b32.xlu1 %v367_v18, %s1186_s23 }
  0xcb   : > { %374 = vrot.lane.b32.xlu0 %v368_v19, %s1186_s23 }
  0xf7   : > { %v1335_v21 = vpop.permute.xlu2 %410 }
  0xf8   : > { %414 = vst.msk [vmem:[#allocation2 + $0xd] sm:$0x1] %vm391_vm3, %v1335_v21 }
  0xff   : > { %v1339_v22 = vpop.permute.xlu2 %415 }
 0x100   : > { %419 = vst.msk [vmem:[#allocation2 + $0xe] sm:$0x1] %vm391_vm3, %v1339_v22 }
 0x107   : > { %v1358_v28 = vpop.permute.xlu2 %432 }
 0x108   : > { %436 = vst.msk [vmem:[#allocation2 + $0x19] sm:$0x1] %vm391_vm3, %v1358_v28 }
 0x10d   : > { %v1392_v39 = vpop.permute.xlu0 %386 }
 0x10e   : > { %392 = vst.msk [vmem:[#allocation2 + $0x9] sm:$0x1] %vm391_vm3, %v1392_v39 }
 0x10f   : > { %v1399_v41 = vpop.permute.xlu2 %448  ;;  %v1401_v42 = vpop.permute.xlu1 %399 }
 0x110   : > { %452 = vst.msk [vmem:[#allocation2 + $0x1c] sm:$0x1] %vm391_vm3, %v1399_v41 }
 0x111   : > { %403 = vst.msk [vmem:[#allocation2 + $0xb] sm:$0x1] %vm391_vm3, %v1401_v42 }
 0x115   : > { %v1441_v54 = vpop.permute.xlu0 %393 }
 0x116   : > { %397 = vst.msk [vmem:[#allocation2 + $0xa] sm:$0x1] %vm391_vm3, %v1441_v54 }
 0x117   : > { %v466_v58 = vpop.permute.xlu2 %465  ;;  %v1454_v59 = vpop.permute.xlu1 %404 }
 0x118   : > { %469 = vst.msk [vmem:[#allocation2 + $0x1f] sm:$0x1] %vm391_vm3, %v466_v58 }
 0x119   : > { %408 = vst.msk [vmem:[#allocation2 + $0xc] sm:$0x1] %vm391_vm3, %v1454_v59 }
 0x11d   : > { %v1462_v61 = vpop.permute.xlu0 %421 }
 0x11e   : > { %425 = vst.msk [vmem:[#allocation2 + $0xf] sm:$0x1] %vm391_vm3, %v1462_v61 }
 0x11f   : > { %v373_v1 = vpop.permute.xlu2 %372  ;;  %v427_v2 = vpop.permute.xlu1 %426 }
 0x120   : > { %382 = vst.msk [vmem:[#allocation2 + $0x10] sm:$0xff] %vm381_vm5, %v373_v1  ;;  %v1039_v1 = vld [vmem:[%s1722_s5 + $0x88] sm:$0xff] }
 0x121   : > { %435 = vst.msk [vmem:[#allocation2 + $0x11] sm:$0x1] %vm389_vm6, %v1358_v28 }
 0x122   : > { %451 = vst.msk [vmem:[#allocation2 + $0x14] sm:$0x1] %vm389_vm6, %v1399_v41 }
 0x123   : > { %468 = vst.msk [vmem:[#allocation2 + $0x17] sm:$0x1] %vm389_vm6, %v466_v58 }
 0x124   : > { %429 = vst.msk [vmem:[#allocation2 + $0x10] sm:$0x1] %vm389_vm6, %v427_v2 }
 0x125   : > { %430 = vst.msk [vmem:[#allocation2 + $0x18] sm:$0x1] %vm391_vm3, %v427_v2  ;;  %v438_v18 = vpop.permute.xlu0 %437  ;;  %v476_v19 = vld [vmem:[#allocation2 + $0x8] sm:$0xff]  ;;  %v1038_v2 = vld [vmem:[%s1722_s5 + $0x80] sm:$0xff] }
 0x126   : > { %440 = vst.msk [vmem:[#allocation2 + $0x12] sm:$0x1] %vm389_vm6, %v438_v18  ;;  %1009 = vmatmul.msk.f32.vlgmr.msrb.gmra.mxu0 %vm355_vm1, %v476_v19  ;;  %v498_v32 = vld [vmem:[#allocation2 + $0x8] sm:$0xfe] }
 0x127   : > { %441 = vst.msk [vmem:[#allocation2 + $0x1a] sm:$0x1] %vm391_vm3, %v438_v18  ;;  %v444_v20 = vpop.permute.xlu1 %443  ;;  %v530_v36 = vrot.slane %v498_v32, 1  ;;  %v641_v38 = vld [vmem:[#allocation2 + $0x8] sm:$0xfc]  ;;  %791 = vmatpush.msrb.mxu0 %v1039_v1 }
 0x128   : > { %446 = vst.msk [vmem:[#allocation2 + $0x13] sm:$0x1] %vm389_vm6, %v444_v20  ;;  %v1117_v18 = vld [vmem:[%s1723_s6] ss:$0 sm:$0xff] }
 0x129   : > { %447 = vst.msk [vmem:[#allocation2 + $0x1b] sm:$0x1] %vm391_vm3, %v444_v20  ;;  %792 = vmatpush.msrb.mxu0 %v1038_v2 }
 0x12b   : > { %793 = vmatpush.msrb.mxu0 %v1037_v3 }
 0x12d   : > { %v455_v28 = vpop.permute.xlu0 %454  ;;  %794 = vmatpush.msrb.mxu0 %v1036_v5 }
 0x12e   : > { %457 = vst.msk [vmem:[#allocation2 + $0x15] sm:$0x1] %vm389_vm6, %v455_v28 }
 0x12f   : > { %458 = vst.msk [vmem:[#allocation2 + $0x1d] sm:$0x1] %vm391_vm3, %v455_v28  ;;  %v460_v29 = vpop.permute.xlu1 %459  ;;  %795 = vmatpush.msrb.mxu0 %v1035_v6 }
 0x130   : > { %462 = vst.msk [vmem:[#allocation2 + $0x16] sm:$0x1] %vm389_vm6, %v460_v29 }
 0x131   : > { %463 = vst.msk [vmem:[#allocation2 + $0x1e] sm:$0x1] %vm391_vm3, %v460_v29 }
 0x135   : > { %v471_v31 = vpop.permute.xlu0 %470 }
 0x136   : > { %474 = vst.msk [vmem:[#allocation2 + $0x28] sm:$0x1] %vm391_vm3, %v471_v31 }
 0x137   : > { %v371_v33 = vpop.permute.xlu1 %370  ;;  %v477_v46 = vld [vmem:[#allocation2 + $0x10] sm:$0xff] }
 0x138   : > { %380 = vst.msk [vmem:[#allocation2] sm:$0xfe] %vm379_vm7, %v371_v33  ;;  %v478_v34 = vld [vmem:[#allocation2 + $0x18] sm:$0xff]  ;;  %v528_v51 = vrot.slane %v477_v46, 1  ;;  %v669_v55 = vrot.slane %v477_v46, 2  ;;  %v1034_v33 = vld [vmem:[%s1722_s5 + $0x60] sm:$0xff] }
 0x139   : > { %390 = vst.msk [vmem:[#allocation2 + $0x1] sm:$0x1] %vm389_vm6, %v1392_v39  ;;  %v531_v35 = vrot.slane %v478_v34, 1  ;;  %1010 = vmatmul.msk.f32.gmra.mxu0 %vm355_vm1, %v478_v34  ;;  %v672_v40 = vrot.slane %v478_v34, 2  ;;  %v1033_v34 = vld [vmem:[%s1722_s5 + $0x58] sm:$0xff] }
 0x13a   : > { %396 = vst.msk [vmem:[#allocation2 + $0x2] sm:$0x1] %vm389_vm6, %v1441_v54  ;;  %796 = vmatpush.msrb.mxu0 %v1034_v33 }
 0x13b   : > { %402 = vst.msk [vmem:[#allocation2 + $0x3] sm:$0x1] %vm389_vm6, %v1401_v42  ;;  %v532_v37 = vsel %vm526_vm8, %v530_v36, %v531_v35  ;;  %v671_v42 = vrot.slane %v641_v38, 2  ;;  %v1052_v36 = vld [vmem:[%s1722_s5 + $0xd0] sm:$0xff]  ;;  %v1031_v38 = vld [vmem:[%s1722_s5 + $0x48] sm:$0xff] }
 0x13c   : > { %407 = vst.msk [vmem:[#allocation2 + $0x4] sm:$0x1] %vm389_vm6, %v1454_v59  ;;  %1007 = vmatmul.msk.f32.vlgmr.msra.gmra.mxu2 %vm355_vm1, %v532_v37  ;;  %v1032_v37 = vld [vmem:[%s1722_s5 + $0x50] sm:$0xff]  ;;  %861 = vmatpush.msrb.mxu3 %v1052_v36 }
 0x13d   : > { %413 = vst.msk [vmem:[#allocation2 + $0x5] sm:$0x1] %vm389_vm6, %v1335_v21  ;;  %v375_v39 = vpop.permute.xlu0 %374  ;;  %v500_v41 = vld [vmem:[#allocation2 + $0x28] sm:$0x1]  ;;  %v673_v44 = vsel %vm667_vm10, %v671_v42, %v672_v40  ;;  %1062 = vmatpush.msra.mxu2 %v1039_v1  ;;  %797 = vmatpush.msrb.mxu0 %v1033_v34  ;;  %v1050_v42 = vld [vmem:[%s1722_s5 + $0xc0] sm:$0xff] }
 0x13e   : > { %418 = vst.msk [vmem:[#allocation2 + $0x6] sm:$0x1] %vm389_vm6, %v1339_v22  ;;  %v535_v43 = vrot.slane %v500_v41, 1  ;;  %v643_v21 = vld [vmem:[#allocation2 + $0x28] sm:$0x3]  ;;  %v763_v41 = vld [vmem:[%s1722_s5 + $0x30] sm:$0xff] }
 0x13f   : > { %424 = vst.msk [vmem:[#allocation2 + $0x7] sm:$0x1] %vm389_vm6, %v1462_v61  ;;  %v676_v47 = vrot.slane %v643_v21, 2  ;;  %1063 = vmatpush.msra.mxu2 %v1038_v2  ;;  %798 = vmatpush.msrb.mxu0 %v1032_v37  ;;  %v761_v21 = vld [vmem:[%s1722_s5 + $0x20] sm:$0xff] }
 0x140   : > { %384 = vst.msk [vmem:[#allocation2 + $0x20] sm:$0x1] %vm383_vm9, %v375_v39  ;;  %v536_v45 = vsel %vm526_vm8, %v531_v35, %v535_v43  ;;  %v765_v35 = vld [vmem:[%s1722_s5 + $0x40] sm:$0xff]  ;;  %v1051_v39 = vld [vmem:[%s1722_s5 + $0xc8] sm:$0xff] }
 0x141   : > { %473 = vst.msk [vmem:[#allocation2 + $0x20] sm:$0x1] %vm389_vm6, %v471_v31  ;;  %1029 = vmatmul.msk.f32.vlgmr.msra.gmra.mxu0 %vm355_vm1, %v673_v44  ;;  %v677_v53 = vsel %vm667_vm10, %v672_v40, %v676_v47  ;;  %1064 = vmatpush.msra.mxu2 %v1037_v3  ;;  %v764_v40 = vld [vmem:[%s1722_s5 + $0x38] sm:$0xff]  ;;  %v762_v43 = vld [vmem:[%s1722_s5 + $0x28] sm:$0xff] }
 0x142   : > { %820 = vmatpush.msrb.mxu1 %v765_v35  ;;  %799 = vmatpush.msrb.mxu0 %v1031_v38  ;;  %v1049_v44 = vld [vmem:[%s1722_s5 + $0xb8] sm:$0xff]  ;;  %v1047_v47 = vld [vmem:[%s1722_s5 + $0xa8] sm:$0xff] }
 0x143   : > { %1065 = vmatpush.msra.mxu2 %v1036_v5  ;;  %862 = vmatpush.msrb.mxu3 %v1051_v39 }
 0x144   : > { %1008 = vmatmul.msk.f32.gmra.mxu2 %vm355_vm1, %v536_v45  ;;  %821 = vmatpush.msrb.mxu1 %v764_v40  ;;  %v1048_v45 = vld [vmem:[%s1722_s5 + $0xb0] sm:$0xff] }
 0x145   : > { %1066 = vmatpush.msra.mxu2 %v1035_v6  ;;  %863 = vmatpush.msrb.mxu3 %v1050_v42 }
 0x146   : > { %v475_v22 = vld [vmem:[#allocation2] sm:$0xff]  ;;  %822 = vmatpush.msrb.mxu1 %v763_v41 }
 0x147   : > { %v497_v48 = vld [vmem:[#allocation2] sm:$0xfe]  ;;  %610 = vmatmul.f32.vlgmr.msra.gmra.mxu3 %v475_v22  ;;  %1067 = vmatpush.msra.mxu2 %v1034_v33  ;;  %v759_v22 = vld [vmem:[%s1722_s5 + $0x10] sm:$0xff] }
 0x148   : > { %v640_v49 = vld [vmem:[#allocation2] sm:$0xfc]  ;;  %v527_v50 = vrot.slane %v497_v48, 1  ;;  %v499_v56 = vld [vmem:[#allocation2 + $0x20] sm:$0x1]  ;;  %823 = vmatpush.msrb.mxu1 %v762_v43  ;;  %864 = vmatpush.msrb.mxu3 %v1049_v44 }
 0x149   : > { %v668_v52 = vrot.slane %v640_v49, 2  ;;  %1030 = vmatmul.msk.f32.gmra.mxu0 %vm355_vm1, %v677_v53  ;;  %v642_v58 = vld [vmem:[#allocation2 + $0x20] sm:$0x3]  ;;  %v533_v59 = vrot.slane %v499_v56, 1  ;;  %1068 = vmatpush.msra.mxu2 %v1033_v34  ;;  %v758_v49 = vld [vmem:[%s1722_s5 + $0x8] sm:$0xff] }
 0x14a   : > { %v529_v54 = vsel %vm526_vm8, %v527_v50, %v528_v51  ;;  %v674_v60 = vrot.slane %v642_v58, 2  ;;  %824 = vmatpush.msrb.mxu1 %v761_v21  ;;  %865 = vmatpush.msrb.mxu3 %v1048_v45  ;;  %v1046_v48 = vld [vmem:[%s1722_s5 + $0xa0] sm:$0xff]  ;;  %v1045_v50 = vld [vmem:[%s1722_s5 + $0x98] sm:$0xff] }
 0x14b   : > { %559 = vmatmul.f32.vlgmr.msra.gmra.mxu1 %v529_v54  ;;  %v670_v57 = vsel %vm667_vm10, %v668_v52, %v669_v55  ;;  %v534_v61 = vsel %vm526_vm8, %v528_v51, %v533_v59  ;;  %1069 = vmatpush.msra.mxu2 %v1032_v37  ;;  %v757_v51 = vld [vmem:[%s1722_s5] sm:$0xff]  ;;  %v1044_v52 = vld [vmem:[%s1722_s5 + $0x90] sm:$0xff] }
 0x14c   : > { %700 = vmatmul.f32.vlgmr.msrb.gmra.mxu2 %v670_v57  ;;  %v675_v62 = vsel %vm667_vm10, %v669_v55, %v674_v60  ;;  %866 = vmatpush.msrb.mxu3 %v1047_v47 }
 0x14d   : > { %1070 = vmatpush.msra.mxu2 %v1031_v38 }
 0x14e   : > { %867 = vmatpush.msrb.mxu3 %v1046_v48 }
 0x14f   : > { %613 = vmatmul.f32.gmra.mxu3 %v477_v46  ;;  %v760_v46 = vld [vmem:[%s1722_s5 + $0x18] sm:$0xff] }
 0x150   : > { %825 = vmatpush.msrb.mxu1 %v760_v46  ;;  %868 = vmatpush.msrb.mxu3 %v1045_v50 }
 0x152   : > { %826 = vmatpush.msrb.mxu1 %v759_v22  ;;  %869 = vmatpush.msrb.mxu3 %v1044_v52 }
 0x153   : > { %562 = vmatmul.f32.gmra.mxu1 %v534_v61 }
 0x154   : > { %703 = vmatmul.f32.gmra.mxu2 %v675_v62  ;;  %827 = vmatpush.msrb.mxu1 %v758_v49 }
 0x156   : > { %828 = vmatpush.msrb.mxu1 %v757_v51 }
 0x1a3   : > { %v634_v63 = vpop.f32.mrf.mxu0 }
 0x1b6   : > { %v637_v4 = vpop.f32.mrf.mxu0 }
 0x1be   : > { %v724_v11 = vpop.f32.mrf.mxu0 }
 0x1bf   : > { %v583_v0 = vpop.f32.mrf.mxu2 }
 0x1c6   : > { %v727_v26 = vpop.f32.mrf.mxu0 }
 0x1c7   : > { %v586_v8 = vpop.f32.mrf.mxu2 }
 0x1c8   : > { %v560_v7 = vpop.f32.mrf.mxu1 }
 0x1c9   : > { %v584_v9 = vadd.f32 %v583_v0, %v560_v7  ;;  %v1118_v0 = vld [vmem:[%s1724_s7] ss:$0 sm:$0xff] }
 0x1ca   : > { %v611_v10 = vpop.f32.mrf.mxu3 }
 0x1cb   : > { %v612_v12 = vadd.f32 %v611_v10, %v584_v9 }
 0x1cd   : > { %v635_v15 = vadd.f32 %v634_v63, %v612_v12 }
 0x1cf   : > { %v701_v14 = vpop.f32.mrf.mxu2 }
 0x1d0   : > { %v563_v13 = vpop.f32.mrf.mxu1  ;;  %v725_v17 = vadd.f32 %v724_v11, %v701_v14 }
 0x1d1   : > { %v587_v16 = vadd.f32 %v586_v8, %v563_v13 }
 0x1d2   : > { %v614_v19 = vpop.f32.mrf.mxu3  ;;  %v730_v20 = vadd.f32 %v725_v17, %v635_v15 }
 0x1d3   : > { %v615_v23 = vadd.f32 %v614_v19, %v587_v16 }
 0x1d4   : > { %v736_v24 = vadd.f32 %v1117_v18, %v730_v20 }
 0x1d5   : > { %v638_v28 = vadd.f32 %v637_v4, %v615_v23 }
 0x1d6   : > { %v738_v25 = vmax.f32 %v736_v24, 0.0 }
 0x1d7   : > { %v704_v27 = vpop.f32.mrf.mxu2 }
 0x1d8   : > { %v728_v29 = vadd.f32 %v727_v26, %v704_v27  ;;  %747 = vrot.lane.b32.xlu1 %v738_v25, %s1186_s23 }
 0x1da   : > { %v731_v30 = vadd.f32 %v728_v29, %v638_v28 }
 0x1dc   : > { %v737_v31 = vadd.f32 %v1117_v18, %v731_v30 }
 0x1de   : > { %v739_v32 = vmax.f32 %v737_v31, 0.0 }
 0x1e0   : > { %749 = vrot.lane.b32.xlu2 %v739_v32, %s1186_s23  ;;  %s1061_s23 = sshll.u32 %s1255_s9, 4  ;;  %s891_s9 = scalar_lea.sflag [#allocation5], %s309_s18 }
 0x1e1   : > { %s902_s25 = scalar_lea.hbm %s1725_s8, %s1061_s23 }
 0x1e2   : > { %s905_s12 = sshll.u32 %s902_s25, 4  ;;  %s906_s12 = int_to_ptr.hbm [resolvable:$true] %s905_s12 }
 0x1e3   : > { %s1133_s13 = sshra.s32 %s906_s12, 4  ;;  %s1134_s13 = int_to_ptr.hbm [resolvable:$true] %s1133_s13 }
 0x1e4   : > { %s1135_s17 = scalar_lea.hbm %s1134_s13, 16  ;;  %p1140_p0 = scmp.lt.s32.totalorder %s1134_s13, %s1725_s8 }
 0x1e5   : > { %p1136_p11 = scmp.ne.s32.totalorder %s1134_s13, %s1135_s17  ;;  %p1141_p1 = scmp.lt.s32.totalorder %s1139_s21, %s1135_s17 }
 0x1e7   : > { %p1137_p12 = pnand %p1136_p11, %p1272_p5  ;;  %p1142_p2 = por %p1141_p1, %p1140_p0 }
 0x1e9   : > { %p1138_p13 = pneg %p1137_p12 }
 0x1eb   : > { %p1143_p3 = pnand %p1142_p2, %p1138_p13 }
 0x23a   : > { %v750_v53 = vpop.permute.xlu2 %749 }
 0x23b   : > { %754 = vst.msk [vmem:[#allocation3 + $0x9] sm:$0xff] %vm381_vm5, %v750_v53 }
 0x242   : > { %v767_v54 = vld [vmem:[#allocation3 + $0x9] sm:$0xff] }
 0x243   : > { %1041 = vmatmul.msk.f32.vlgmr.msra.gmra.mxu2 %vm740_vm11, %v767_v54  ;;  %v837_v60 = vld [vmem:[#allocation3 + $0xa] sm:$0xff] }
 0x24a   : > { %v748_v55 = vpop.permute.xlu1 %747 }
 0x24b   : > { %753 = vst.msk [vmem:[#allocation3 + $0x1] sm:$0xff] %vm381_vm5, %v748_v55 }
 0x252   : > { %v766_v56 = vld [vmem:[#allocation3 + $0x1] sm:$0xff] }
 0x253   : > { %v755_v57 = vld [vmem:[#allocation3] sm:$0xff]  ;;  %1040 = vmatmul.msk.f32.vlgmr.msrb.gmra.mxu0 %vm740_vm11, %v766_v56  ;;  %v756_v59 = vld [vmem:[#allocation3 + $0x8] sm:$0xff] }
 0x254   : > { %v836_v58 = vld [vmem:[#allocation3 + $0x2] sm:$0xff]  ;;  %1042 = vmatmul.msk.f32.vlgmr.msrb.gmra.mxu1 %vm740_vm11, %v755_v57 }
 0x255   : > { %1053 = vmatmul.msk.f32.vlgmr.msrb.gmra.mxu3 %vm740_vm11, %v836_v58 }
 0x25c   : > { %1043 = vmatmul.msk.f32.gmra.mxu1 %vm740_vm11, %v756_v59 }
 0x25d   : > { %1054 = vmatmul.msk.f32.gmra.mxu3 %vm740_vm11, %v837_v60 }
 0x2c6   : > { %v804_v6 = vpop.f32.mrf.mxu2 }
 0x2d0   : > { %v801_v62 = vpop.f32.mrf.mxu0 }
 0x2d1   : > { %v830_v61 = vpop.f32.mrf.mxu1 }
 0x2d2   : > { %v831_v63 = vadd.f32 %v830_v61, %v801_v62 }
 0x2d8   : > { %v871_v1 = vpop.f32.mrf.mxu3 }
 0x2d9   : > { %v877_v2 = vadd.f32 %v871_v1, %v831_v63  ;;  %v833_v4 = vpop.f32.mrf.mxu1 }
 0x2da   : > { %v834_v7 = vadd.f32 %v833_v4, %v804_v6 }
 0x2db   : > { %v883_v3 = vadd.f32 %v1118_v0, %v877_v2 }
 0x2dd   : > { %v885_v5 = vmax.f32 %v883_v3, 0.0 }
 0x2df   : > { %888 = vst.msk [vmem:[%s311_s26] sm:$0xff] %vm887_vm13, %v885_v5 }
 0x2e0   : > { %v874_v8 = vpop.f32.mrf.mxu3 }
 0x2e1   : > { %v878_v9 = vadd.f32 %v874_v8, %v834_v7 }
 0x2e3   : > { %v884_v10 = vadd.f32 %v1118_v0, %v878_v9 }
 0x2e5   : > { %v886_v12 = vmax.f32 %v884_v10, 0.0 }
 0x2e7   : > { %889 = vst.msk [vmem:[%s311_s26 + $0x8] sm:$0xff] %vm887_vm13, %v886_v12 }
 0x2e8   : > { %1146 = shalt.err (!%p1143_p3)
}
 0x2e9   : > { %s1187_s18 = smov 128   ;;  %s1188_s24 = smov 8  }
 0x2ea   : > { %1071 = dma.vmem_to_hbm [thread:$0]  (%p1272_p5), %s904_s10, 256, %s906_s12, %s891_s9, %s1187_s18, %s1187_s18, %s1188_s24  }
 0x2eb PF: > { %p1077_p4 = scmp.ge.s32.totalorder %s1181_s30, 2  ;;  %s920_s25 = sand.u32 1, %s1169_s27  }
 0x2ec   : > { %s921_s26 = scalar_lea.sflag [#allocation5], %s920_s25 }
 0x2ed   : > { %p1074_p7 = pnand %p1077_p4, %p1276_p6 }
 0x2ef   : > { %p1075_p8 = pneg %p1074_p7 }
 0x2f1   : > { %1164 = dma.done.wait (%p1075_p8), %s921_s26, 256  }
 0x2f2   : > { %1166 = vsyncadd (%p1075_p8), %s921_s26, 4294967040  ;;  %p18_p9 = scmp.ge.s32.totalorder %s1259_s11, 4   ;;  %s1728_s27 = smov %s1173_s28 }
 0x2f3   : > { %s1729_s28 = smov %s1177_s29  ;;  %s1730_s29 = smov %s1270_s14 }
 0x2f4   : > { %s1731_s30 = smov %s1259_s11  ;;  %20 = sbr.rel (!%p18_p9) target bundleno = 3 (0x3), region = 94 }
 0x2f9   :  { %927 = vsyncpa [#allocation5], 1 }
 0x2fa   :  { %929 = vsyncpa [#allocation5 + $0x1], 1 }

</bundles_post_ra>
